<compile_context>
chip_gen: v7x
topology: tpu7x:2x2x1
jax: 0.10.0
libtpu: 0.0.40
codegen_flags: <defaults>
</compile_context>

<pallas_src>
import jax
import jax.numpy as jnp
from jax.experimental import pallas as pl
from jax.experimental.pallas import tpu as pltpu


def _round_up(x, m):
    return ((x + m - 1) // m) * m


def _cdiv(a, b):
    return -(-a // b)


# ----------------------------------------------------------------------------
# Kernel
# ----------------------------------------------------------------------------
def _three_layer_kernel(x_ref, w1_ref, b1_ref, w2_ref, b2_ref, w3_ref, b3_ref,
                        out_ref):
    # Cast x to the weight compute dtype (bf16) right before the MXU; if the
    # caller already supplies bf16 x this is a no-op.  All dots accumulate f32.
    cd = w1_ref.dtype
    x = x_ref[...].astype(cd)

    # Layer 1: Linear + tanh (f32 accumulate, f32 bias, f32 tanh on VPU/EUP)
    h1 = jnp.dot(x, w1_ref[...], preferred_element_type=jnp.float32)
    h1 = jnp.tanh(h1 + b1_ref[...])

    # Layer 2: Linear + tanh
    h2 = jnp.dot(h1.astype(cd), w2_ref[...], preferred_element_type=jnp.float32)
    h2 = jnp.tanh(h2 + b2_ref[...])

    # Layer 3: Linear (output lanes padded to a multiple of 128 -> unmasked vst)
    y = jnp.dot(h2.astype(cd), w3_ref[...], preferred_element_type=jnp.float32)
    out_ref[...] = (y + b3_ref[...]).astype(out_ref.dtype)


# ----------------------------------------------------------------------------
# Parameter preparation (done ONCE, outside the hot call path)
# ----------------------------------------------------------------------------
def prepare_params(params, *, compute_dtype=jnp.bfloat16, lane=128):
    """Convert torch-convention params ([out, in] weights, [out] biases) into
    the kernel layout: [in, out] weights in `compute_dtype`, [1, out] f32
    biases, with ALL dims zero-padded to a multiple of `lane` (128)."""
    in_dim = params["w1"].shape[1]
    h1_dim = params["w1"].shape[0]
    h2_dim = params["w2"].shape[0]
    out_dim = params["w3"].shape[0]

    in_pad = _round_up(in_dim, lane)
    h1_pad = _round_up(h1_dim, lane)
    h2_pad = _round_up(h2_dim, lane)
    out_pad = _round_up(out_dim, lane)

    def pad2(w, rows, cols):
        return jnp.pad(w, ((0, rows - w.shape[0]), (0, cols - w.shape[1])))

    w1t = pad2(jnp.asarray(params["w1"], jnp.float32).T, in_pad, h1_pad)
    w2t = pad2(jnp.asarray(params["w2"], jnp.float32).T, h1_pad, h2_pad)
    w3t = pad2(jnp.asarray(params["w3"], jnp.float32).T, h2_pad, out_pad)
    w1t = w1t.astype(compute_dtype)
    w2t = w2t.astype(compute_dtype)
    w3t = w3t.astype(compute_dtype)

    b1 = jnp.pad(jnp.asarray(params["b1"], jnp.float32), (0, h1_pad - h1_dim))[None, :]
    b2 = jnp.pad(jnp.asarray(params["b2"], jnp.float32), (0, h2_pad - h2_dim))[None, :]
    b3 = jnp.pad(jnp.asarray(params["b3"], jnp.float32), (0, out_pad - out_dim))[None, :]

    # Narrow heads (out_dim well below one lane-group) store bf16 in the padded
    # slab to avoid up-to-32x f32 writeback inflation; wide outputs stay f32.
    out_store_dtype = jnp.bfloat16 if out_dim <= 64 else jnp.float32

    return {"w1t": w1t, "b1": b1, "w2t": w2t, "b2": b2, "w3t": w3t, "b3": b3,
            "in_dim": in_dim, "out_dim": out_dim,
            "out_store_dtype": out_store_dtype}


# ----------------------------------------------------------------------------
# Wrapper
# ----------------------------------------------------------------------------
def three_layer_net(x, prepared, *, block_batch=512):
    """Forward pass matching torch ThreeLayerNet.forward.

    x: [batch, input_dim] float32 (bf16 also accepted -- halves the dominant
       HBM read at small/moderate hidden dims).
    prepared: output of prepare_params(...).
    block_batch: max batch tile. 512 amortizes per-grid-step overhead well on
       v5e/v6e (tiles only need to be multiples of 8; MXU shape is not a
       constraint here).  Actual tiles are balanced across grid steps.
    """
    batch, in_dim = x.shape
    w1t, b1 = prepared["w1t"], prepared["b1"]
    w2t, b2 = prepared["w2t"], prepared["b2"]
    w3t, b3 = prepared["w3t"], prepared["b3"]
    out_dim = prepared["out_dim"]
    out_store_dtype = prepared["out_store_dtype"]
    assert in_dim == prepared["in_dim"]

    in_pad, h1_pad = w1t.shape
    h2_pad, out_pad = w3t.shape

    # --- batch tiling: balanced tiles, >=2 grid steps when possible ---------
    padded8 = _round_up(max(batch, 8), 8)
    num_tiles = _cdiv(padded8, block_batch)
    if num_tiles == 1 and padded8 >= 16:
        num_tiles = 2           # let ("parallel",) shard across v7x's 2 TCs
    tb = _round_up(_cdiv(padded8, num_tiles), 8)
    padded_batch = num_tiles * tb
    grid = (num_tiles,)

    pad_rows = padded_batch - batch
    pad_cols = in_pad - in_dim
    if pad_rows or pad_cols:
        x = jnp.pad(x, ((0, pad_rows), (0, pad_cols)))

    # --- explicit VMEM budget ------------------------------------------------
    x_bytes = jnp.dtype(x.dtype).itemsize
    o_bytes = jnp.dtype(out_store_dtype).itemsize
    w_bytes = jnp.dtype(w1t.dtype).itemsize
    need = (
        (in_pad * h1_pad + h1_pad * h2_pad + h2_pad * out_pad) * w_bytes  # weights (single-buffered)
        + (h1_pad + h2_pad + out_pad) * 4                                 # biases (f32)
        + 2 * tb * in_pad * x_bytes                                       # double-buffered x tiles
        + 2 * tb * out_pad * o_bytes                                      # double-buffered out tiles
        + 2 * tb * (h1_pad + h2_pad) * 4                                  # activation / spill slack
    )
    try:
        cap = int(pltpu.get_tpu_info().vmem_capacity_bytes * 0.85)
    except Exception:
        cap = 56 << 20   # conservative: fits v7x's 64 MiB physical VMEM
    vmem_limit = int(min(cap, max(need + (8 << 20), 32 << 20)))

    out_shape = jax.ShapeDtypeStruct((padded_batch, out_pad), out_store_dtype)
    out_spec = pl.BlockSpec((tb, out_pad), lambda i: (i, 0))
    compiler_params = pltpu.CompilerParams(
        dimension_semantics=("parallel",),
        vmem_limit_bytes=vmem_limit)

    def build_in_specs(single_buffer_weights):
        if single_buffer_weights:
            def resident(a):
                # Block index never changes -> loaded once, stays VMEM-resident.
                # Single-buffered: double-buffering a constant block is wasted VMEM.
                return pl.BlockSpec(a.shape, lambda i: (0,) * a.ndim,
                                    pipeline_mode=pl.Buffered(1))
        else:
            def resident(a):
                return pl.BlockSpec(a.shape, lambda i: (0,) * a.ndim)
        return [
            pl.BlockSpec((tb, in_pad), lambda i: (i, 0)),   # x: tiled on batch
            resident(w1t), resident(b1),
            resident(w2t), resident(b2),
            resident(w3t), resident(b3),
        ]

    args = (x, w1t, b1, w2t, b2, w3t, b3)
    try:
        out = pl.pallas_call(
            _three_layer_kernel,
            out_shape=out_shape,
            grid=grid,
            in_specs=build_in_specs(True),
            out_specs=out_spec,
            compiler_params=compiler_params,
        )(*args)
    except Exception:
        # Fallback for jax versions that reject Buffered(1): default pipelining.
        out = pl.pallas_call(
            _three_layer_kernel,
            out_shape=out_shape,
            grid=grid,
            in_specs=build_in_specs(False),
            out_specs=out_spec,
            compiler_params=compiler_params,
        )(*args)

    # Slice off batch/lane padding; restore torch f32 output dtype (tiny array).
    return out[:batch, :out_dim].astype(jnp.float32)


# ----------------------------------------------------------------------------
# References
# ----------------------------------------------------------------------------
def reference_forward(x, params):
    """Pure f32 torch-semantics reference."""
    h1 = jnp.tanh(x @ params["w1"].T + params["b1"])
    h2 = jnp.tanh(h1 @ params["w2"].T + params["b2"])
    return h2 @ params["w3"].T + params["b3"]


def reference_forward_prepared(x, prepared):
    """Reference mirroring the kernel math (bf16 weights/activations, f32 acc,
    padded dims, bf16 output store for narrow heads)."""
    cd = prepared["w1t"].dtype
    in_pad = prepared["w1t"].shape[0]
    xp = jnp.pad(x, ((0, 0), (0, in_pad - x.shape[1])))
    h1 = jnp.tanh(
        jnp.dot(xp.astype(cd), prepared["w1t"],
                preferred_element_type=jnp.float32) + prepared["b1"])
    h2 = jnp.tanh(
        jnp.dot(h1.astype(cd), prepared["w2t"],
                preferred_element_type=jnp.float32) + prepared["b2"])
    y = jnp.dot(h2.astype(cd), prepared["w3t"],
                preferred_element_type=jnp.float32) + prepared["b3"]
    y = y.astype(prepared["out_store_dtype"]).astype(jnp.float32)
    return y[:, :prepared["out_dim"]]


def init_params(key, input_dim, hidden1, hidden2, output_dim):
    """Deterministic init mimicking torch.nn.Linear default U[-1/sqrt(in), 1/sqrt(in)]."""
    ks = jax.random.split(key, 6)

    def lin(kw, kb, fan_in, fan_out):
        bound = 1.0 / jnp.sqrt(fan_in)
        w = jax.random.uniform(kw, (fan_out, fan_in), jnp.float32, -bound, bound)
        b = jax.random.uniform(kb, (fan_out,), jnp.float32, -bound, bound)
        return w, b

    w1, b1 = lin(ks[0], ks[1], input_dim, hidden1)
    w2, b2 = lin(ks[2], ks[3], hidden1, hidden2)
    w3, b3 = lin(ks[4], ks[5], hidden2, output_dim)
    return {"w1": w1, "b1": b1, "w2": w2, "b2": b2, "w3": w3, "b3": b3}


if __name__ == "__main__":
    key = jax.random.PRNGKey(0)
    k_x, k_p = jax.random.split(key)

    batch, input_dim, hidden1, hidden2, output_dim = 8, 16, 32, 32, 4
    x = jax.random.normal(k_x, (batch, input_dim), jnp.float32)
    params = init_params(k_p, input_dim, hidden1, hidden2, output_dim)

    # One-time parameter prep: transpose to [in, out], cast to bf16, pad every
    # dim to a multiple of 128 (hoisted out of the per-call path).
    prepared = prepare_params(params)

    y = three_layer_net(x, prepared)
    y = jax.block_until_ready(y)
    assert y.shape == (batch, output_dim)

    # Check vs a reference that does the same bf16-weight / f32-accumulate math.
    y_ref_same_math = reference_forward_prepared(x, prepared)
    assert jnp.allclose(y, y_ref_same_math, atol=1e-2, rtol=1e-2), \
        "mismatch vs bf16-math reference"

    # Loose sanity check vs the pure f32 torch-semantics reference
    # (difference is only bf16 weight/activation/output quantization).
    y_ref_f32 = reference_forward(x, params)
    assert jnp.allclose(y, y_ref_f32, atol=5e-2, rtol=5e-2), \
        "mismatch vs f32 reference"

    print("KERNEL_OK")
</pallas_src>

<mosaic_0001>
module attributes {stable_mosaic.version = 11 : i64} {
  func.func @_three_layer_kernel(%arg0: i32, %arg1: memref<8x128xf32, #tpu.memory_space<vmem>>, %arg2: memref<128x128xbf16, #tpu.memory_space<vmem>>, %arg3: memref<1x128xf32, #tpu.memory_space<vmem>>, %arg4: memref<128x128xbf16, #tpu.memory_space<vmem>>, %arg5: memref<1x128xf32, #tpu.memory_space<vmem>>, %arg6: memref<128x128xbf16, #tpu.memory_space<vmem>>, %arg7: memref<1x128xf32, #tpu.memory_space<vmem>>, %arg8: memref<8x128xbf16, #tpu.memory_space<vmem>>) attributes {dimension_semantics = [#tpu.dimension_semantics<parallel>], iteration_bounds = array<i64: 1>, scalar_prefetch = 0 : i64, scratch_operands = 0 : i64, tpu.core_type = #tpu.core_type<tc>, window_params = [{transform_indices = @transform_0, window_bounds = array<i64: 8, 128>}, {pipeline_mode = #tpu.pipeline_mode<synchronous>, transform_indices = @transform_1, window_bounds = array<i64: 128, 128>}, {pipeline_mode = #tpu.pipeline_mode<synchronous>, transform_indices = @transform_2, window_bounds = array<i64: 1, 128>}, {pipeline_mode = #tpu.pipeline_mode<synchronous>, transform_indices = @transform_3, window_bounds = array<i64: 128, 128>}, {pipeline_mode = #tpu.pipeline_mode<synchronous>, transform_indices = @transform_4, window_bounds = array<i64: 1, 128>}, {pipeline_mode = #tpu.pipeline_mode<synchronous>, transform_indices = @transform_5, window_bounds = array<i64: 128, 128>}, {pipeline_mode = #tpu.pipeline_mode<synchronous>, transform_indices = @transform_6, window_bounds = array<i64: 1, 128>}, {transform_indices = @transform_7, window_bounds = array<i64: 8, 128>}]} {
    %c0 = arith.constant 0 : index
    %c0_0 = arith.constant 0 : index
    %0 = vector.load %arg1[%c0, %c0_0] : memref<8x128xf32, #tpu.memory_space<vmem>>, vector<8x128xf32>
    %1 = arith.truncf %0 : vector<8x128xf32> to vector<8x128xbf16>
    %c0_1 = arith.constant 0 : index
    %c0_2 = arith.constant 0 : index
    %2 = vector.load %arg2[%c0_1, %c0_2] : memref<128x128xbf16, #tpu.memory_space<vmem>>, vector<128x128xbf16>
    %cst = arith.constant dense<0.000000e+00> : vector<8x128xf32>
    %3 = tpu.matmul %1, %2, %cst {dimension_numbers = #tpu.dot_dimension_numbers<[1], [0], [0], [1], [0, 0, 1, 1], [], []>} : vector<8x128xbf16>, vector<128x128xbf16>, vector<8x128xf32> -> vector<8x128xf32>
    %c0_3 = arith.constant 0 : index
    %c0_4 = arith.constant 0 : index
    %4 = vector.load %arg3[%c0_3, %c0_4] : memref<1x128xf32, #tpu.memory_space<vmem>>, vector<1x128xf32>
    %5 = vector.broadcast %4 : vector<1x128xf32> to vector<8x128xf32>
    %6 = arith.addf %3, %5 : vector<8x128xf32>
    %7 = math.tanh %6 : vector<8x128xf32>
    %8 = arith.truncf %7 : vector<8x128xf32> to vector<8x128xbf16>
    %c0_5 = arith.constant 0 : index
    %c0_6 = arith.constant 0 : index
    %9 = vector.load %arg4[%c0_5, %c0_6] : memref<128x128xbf16, #tpu.memory_space<vmem>>, vector<128x128xbf16>
    %cst_7 = arith.constant dense<0.000000e+00> : vector<8x128xf32>
    %10 = tpu.matmul %8, %9, %cst_7 {dimension_numbers = #tpu.dot_dimension_numbers<[1], [0], [0], [1], [0, 0, 1, 1], [], []>} : vector<8x128xbf16>, vector<128x128xbf16>, vector<8x128xf32> -> vector<8x128xf32>
    %c0_8 = arith.constant 0 : index
    %c0_9 = arith.constant 0 : index
    %11 = vector.load %arg5[%c0_8, %c0_9] : memref<1x128xf32, #tpu.memory_space<vmem>>, vector<1x128xf32>
    %12 = vector.broadcast %11 : vector<1x128xf32> to vector<8x128xf32>
    %13 = arith.addf %10, %12 : vector<8x128xf32>
    %14 = math.tanh %13 : vector<8x128xf32>
    %15 = arith.truncf %14 : vector<8x128xf32> to vector<8x128xbf16>
    %c0_10 = arith.constant 0 : index
    %c0_11 = arith.constant 0 : index
    %16 = vector.load %arg6[%c0_10, %c0_11] : memref<128x128xbf16, #tpu.memory_space<vmem>>, vector<128x128xbf16>
    %cst_12 = arith.constant dense<0.000000e+00> : vector<8x128xf32>
    %17 = tpu.matmul %15, %16, %cst_12 {dimension_numbers = #tpu.dot_dimension_numbers<[1], [0], [0], [1], [0, 0, 1, 1], [], []>} : vector<8x128xbf16>, vector<128x128xbf16>, vector<8x128xf32> -> vector<8x128xf32>
    %c0_13 = arith.constant 0 : index
    %c0_14 = arith.constant 0 : index
    %18 = vector.load %arg7[%c0_13, %c0_14] : memref<1x128xf32, #tpu.memory_space<vmem>>, vector<1x128xf32>
    %19 = vector.broadcast %18 : vector<1x128xf32> to vector<8x128xf32>
    %20 = arith.addf %17, %19 : vector<8x128xf32>
    %21 = arith.truncf %20 : vector<8x128xf32> to vector<8x128xbf16>
    %c0_15 = arith.constant 0 : index
    %c0_16 = arith.constant 0 : index
    %22 = vector.load %arg8[%c0_15, %c0_16] : memref<8x128xbf16, #tpu.memory_space<vmem>>, vector<8x128xbf16>
    tpu.vector_store %arg8[%c0_15, %c0_16], %21 {strides = array<i32>} : memref<8x128xbf16, #tpu.memory_space<vmem>>, vector<8x128xbf16>,
    return
  }
  func.func @transform_0(%arg0: i32) -> (i32, i32) {
    %c0_i32 = arith.constant 0 : i32
    %c0_i32_0 = arith.constant 0 : i32
    return %arg0, %c0_i32 : i32, i32
  }
  func.func @transform_1(%arg0: i32) -> (i32, i32) {
    %c0_i32 = arith.constant 0 : i32
    %c0_i32_0 = arith.constant 0 : i32
    %c0_i32_1 = arith.constant 0 : i32
    return %c0_i32, %c0_i32_0 : i32, i32
  }
  func.func @transform_2(%arg0: i32) -> (i32, i32) {
    %c0_i32 = arith.constant 0 : i32
    %c0_i32_0 = arith.constant 0 : i32
    %c0_i32_1 = arith.constant 0 : i32
    return %c0_i32, %c0_i32_0 : i32, i32
  }
  func.func @transform_3(%arg0: i32) -> (i32, i32) {
    %c0_i32 = arith.constant 0 : i32
    %c0_i32_0 = arith.constant 0 : i32
    %c0_i32_1 = arith.constant 0 : i32
    return %c0_i32, %c0_i32_0 : i32, i32
  }
  func.func @transform_4(%arg0: i32) -> (i32, i32) {
    %c0_i32 = arith.constant 0 : i32
    %c0_i32_0 = arith.constant 0 : i32
    %c0_i32_1 = arith.constant 0 : i32
    return %c0_i32, %c0_i32_0 : i32, i32
  }
  func.func @transform_5(%arg0: i32) -> (i32, i32) {
    %c0_i32 = arith.constant 0 : i32
    %c0_i32_0 = arith.constant 0 : i32
    %c0_i32_1 = arith.constant 0 : i32
    return %c0_i32, %c0_i32_0 : i32, i32
  }
  func.func @transform_6(%arg0: i32) -> (i32, i32) {
    %c0_i32 = arith.constant 0 : i32
    %c0_i32_0 = arith.constant 0 : i32
    %c0_i32_1 = arith.constant 0 : i32
    return %c0_i32, %c0_i32_0 : i32, i32
  }
  func.func @transform_7(%arg0: i32) -> (i32, i32) {
    %c0_i32 = arith.constant 0 : i32
    %c0_i32_0 = arith.constant 0 : i32
    return %arg0, %c0_i32 : i32, i32
  }
}

module attributes {stable_mosaic.version = 11 : i64} {
  func.func @_three_layer_kernel(%arg0: i32, %arg1: memref<8x128xf32, #tpu.memory_space<vmem>>, %arg2: memref<128x128xbf16, #tpu.memory_space<vmem>>, %arg3: memref<1x128xf32, #tpu.memory_space<vmem>>, %arg4: memref<128x128xbf16, #tpu.memory_space<vmem>>, %arg5: memref<1x128xf32, #tpu.memory_space<vmem>>, %arg6: memref<128x128xbf16, #tpu.memory_space<vmem>>, %arg7: memref<1x128xf32, #tpu.memory_space<vmem>>, %arg8: memref<8x128xbf16, #tpu.memory_space<vmem>>) attributes {dimension_semantics = [#tpu.dimension_semantics<parallel>], iteration_bounds = array<i64: 1>, scalar_prefetch = 0 : i64, scratch_operands = 0 : i64, tpu.core_type = #tpu.core_type<tc>, window_params = [{transform_indices = @transform_0, window_bounds = array<i64: 8, 128>}, {pipeline_mode = #tpu.pipeline_mode<synchronous>, transform_indices = @transform_1, window_bounds = array<i64: 128, 128>}, {pipeline_mode = #tpu.pipeline_mode<synchronous>, transform_indices = @transform_2, window_bounds = array<i64: 1, 128>}, {pipeline_mode = #tpu.pipeline_mode<synchronous>, transform_indices = @transform_3, window_bounds = array<i64: 128, 128>}, {pipeline_mode = #tpu.pipeline_mode<synchronous>, transform_indices = @transform_4, window_bounds = array<i64: 1, 128>}, {pipeline_mode = #tpu.pipeline_mode<synchronous>, transform_indices = @transform_5, window_bounds = array<i64: 128, 128>}, {pipeline_mode = #tpu.pipeline_mode<synchronous>, transform_indices = @transform_6, window_bounds = array<i64: 1, 128>}, {transform_indices = @transform_7, window_bounds = array<i64: 8, 128>}]} {
    %c0 = arith.constant 0 : index
    %c0_0 = arith.constant 0 : index
    %0 = vector.load %arg1[%c0, %c0_0] : memref<8x128xf32, #tpu.memory_space<vmem>>, vector<8x128xf32>
    %1 = arith.truncf %0 : vector<8x128xf32> to vector<8x128xbf16>
    %c0_1 = arith.constant 0 : index
    %c0_2 = arith.constant 0 : index
    %2 = vector.load %arg2[%c0_1, %c0_2] : memref<128x128xbf16, #tpu.memory_space<vmem>>, vector<128x128xbf16>
    %cst = arith.constant dense<0.000000e+00> : vector<8x128xf32>
    %3 = tpu.matmul %1, %2, %cst {dimension_numbers = #tpu.dot_dimension_numbers<[1], [0], [0], [1], [0, 0, 1, 1], [], []>} : vector<8x128xbf16>, vector<128x128xbf16>, vector<8x128xf32> -> vector<8x128xf32>
    %c0_3 = arith.constant 0 : index
    %c0_4 = arith.constant 0 : index
    %4 = vector.load %arg3[%c0_3, %c0_4] : memref<1x128xf32, #tpu.memory_space<vmem>>, vector<1x128xf32>
    %5 = vector.broadcast %4 : vector<1x128xf32> to vector<8x128xf32>
    %6 = arith.addf %3, %5 : vector<8x128xf32>
    %7 = math.tanh %6 : vector<8x128xf32>
    %8 = arith.truncf %7 : vector<8x128xf32> to vector<8x128xbf16>
    %c0_5 = arith.constant 0 : index
    %c0_6 = arith.constant 0 : index
    %9 = vector.load %arg4[%c0_5, %c0_6] : memref<128x128xbf16, #tpu.memory_space<vmem>>, vector<128x128xbf16>
    %cst_7 = arith.constant dense<0.000000e+00> : vector<8x128xf32>
    %10 = tpu.matmul %8, %9, %cst_7 {dimension_numbers = #tpu.dot_dimension_numbers<[1], [0], [0], [1], [0, 0, 1, 1], [], []>} : vector<8x128xbf16>, vector<128x128xbf16>, vector<8x128xf32> -> vector<8x128xf32>
    %c0_8 = arith.constant 0 : index
    %c0_9 = arith.constant 0 : index
    %11 = vector.load %arg5[%c0_8, %c0_9] : memref<1x128xf32, #tpu.memory_space<vmem>>, vector<1x128xf32>
    %12 = vector.broadcast %11 : vector<1x128xf32> to vector<8x128xf32>
    %13 = arith.addf %10, %12 : vector<8x128xf32>
    %14 = math.tanh %13 : vector<8x128xf32>
    %15 = arith.truncf %14 : vector<8x128xf32> to vector<8x128xbf16>
    %c0_10 = arith.constant 0 : index
    %c0_11 = arith.constant 0 : index
    %16 = vector.load %arg6[%c0_10, %c0_11] : memref<128x128xbf16, #tpu.memory_space<vmem>>, vector<128x128xbf16>
    %cst_12 = arith.constant dense<0.000000e+00> : vector<8x128xf32>
    %17 = tpu.matmul %15, %16, %cst_12 {dimension_numbers = #tpu.dot_dimension_numbers<[1], [0], [0], [1], [0, 0, 1, 1], [], []>} : vector<8x128xbf16>, vector<128x128xbf16>, vector<8x128xf32> -> vector<8x128xf32>
    %c0_13 = arith.constant 0 : index
    %c0_14 = arith.constant 0 : index
    %18 = vector.load %arg7[%c0_13, %c0_14] : memref<1x128xf32, #tpu.memory_space<vmem>>, vector<1x128xf32>
    %19 = vector.broadcast %18 : vector<1x128xf32> to vector<8x128xf32>
    %20 = arith.addf %17, %19 : vector<8x128xf32>
    %21 = arith.truncf %20 : vector<8x128xf32> to vector<8x128xbf16>
    %c0_15 = arith.constant 0 : index
    %c0_16 = arith.constant 0 : index
    %22 = vector.load %arg8[%c0_15, %c0_16] : memref<8x128xbf16, #tpu.memory_space<vmem>>, vector<8x128xbf16>
    tpu.vector_store %arg8[%c0_15, %c0_16], %21 {strides = array<i32>} : memref<8x128xbf16, #tpu.memory_space<vmem>>, vector<8x128xbf16>,
    return
  }
  func.func @transform_0(%arg0: i32) -> (i32, i32) {
    %c0_i32 = arith.constant 0 : i32
    %c0_i32_0 = arith.constant 0 : i32
    return %arg0, %c0_i32 : i32, i32
  }
  func.func @transform_1(%arg0: i32) -> (i32, i32) {
    %c0_i32 = arith.constant 0 : i32
    %c0_i32_0 = arith.constant 0 : i32
    %c0_i32_1 = arith.constant 0 : i32
    return %c0_i32, %c0_i32_0 : i32, i32
  }
  func.func @transform_2(%arg0: i32) -> (i32, i32) {
    %c0_i32 = arith.constant 0 : i32
    %c0_i32_0 = arith.constant 0 : i32
    %c0_i32_1 = arith.constant 0 : i32
    return %c0_i32, %c0_i32_0 : i32, i32
  }
  func.func @transform_3(%arg0: i32) -> (i32, i32) {
    %c0_i32 = arith.constant 0 : i32
    %c0_i32_0 = arith.constant 0 : i32
    %c0_i32_1 = arith.constant 0 : i32
    return %c0_i32, %c0_i32_0 : i32, i32
  }
  func.func @transform_4(%arg0: i32) -> (i32, i32) {
    %c0_i32 = arith.constant 0 : i32
    %c0_i32_0 = arith.constant 0 : i32
    %c0_i32_1 = arith.constant 0 : i32
    return %c0_i32, %c0_i32_0 : i32, i32
  }
  func.func @transform_5(%arg0: i32) -> (i32, i32) {
    %c0_i32 = arith.constant 0 : i32
    %c0_i32_0 = arith.constant 0 : i32
    %c0_i32_1 = arith.constant 0 : i32
    return %c0_i32, %c0_i32_0 : i32, i32
  }
  func.func @transform_6(%arg0: i32) -> (i32, i32) {
    %c0_i32 = arith.constant 0 : i32
    %c0_i32_0 = arith.constant 0 : i32
    %c0_i32_1 = arith.constant 0 : i32
    return %c0_i32, %c0_i32_0 : i32, i32
  }
  func.func @transform_7(%arg0: i32) -> (i32, i32) {
    %c0_i32 = arith.constant 0 : i32
    %c0_i32_0 = arith.constant 0 : i32
    return %arg0, %c0_i32 : i32, i32
  }
}

</mosaic_0001>

<bundles_post_ra>
// kernel: tpu_custom_call.1
= control target key start
LH: loop header
LB: loop body
LE: loop exit
PB: predicated region body
PF: predicated region fallthrough
CT: control target
= control target key end

     0   :  { %12 = vsyncpa [#allocation3], 0  ;;  %s865_s0 = inlined_call_operand.hbm [shape: f32[8,128], index: 0, kind: input, shape index: {}]   ;;  %s866_s1 = inlined_call_operand.hbm [shape: bf16[128,128], index: 1, kind: input, shape index: {}]   ;;  %s867_s2 = inlined_call_operand.vmem [shape: f32[1,128], index: 2, kind: input, shape index: {}]   ;;  %s868_s3 = inlined_call_operand.hbm [shape: bf16[128,128], index: 3, kind: input, shape index: {}]   ;;  %s869_s4 = inlined_call_operand.vmem [shape: f32[1,128], index: 4, kind: input, shape index: {}]   ;;  %s870_s5 = inlined_call_operand.hbm [shape: bf16[128,128], index: 5, kind: input, shape index: {}]   ;;  %s871_s6 = inlined_call_operand.vmem [shape: f32[1,128], index: 6, kind: input, shape index: {}]   ;;  %s872_s7 = inlined_call_operand.hbm [shape: bf16[8,128], index: 7, kind: output, shape index: {}]  }
   0x1   :  { %13 = vsyncpa [#allocation6], 0 }
   0x2   :  { %14 = vsyncpa [#allocation9], 0 }
   0x3   :  { %15 = vsyncpa [#allocation4], 0  ;;  %s708_s24 = smov [#allocation5]   ;;  %s590_s28 = scalar_lea.hbm %s866_s1, 1024 }
   0x4   :  { %s31_s25 = sshll.u32 %s708_s24, 4  ;;  %p591_p0 = scmp.ne.s32.totalorder %s866_s1, %s590_s28  ;;  %s32_s25 = int_to_ptr.vmem [resolvable:$true] %s31_s25 }
   0x5   :  { %p594_p1 = scmp.lt.u32.totalorder %s590_s28, %s866_s1 }
   0x7   :  { %p596_p2 = pnand %p594_p1, %p591_p0 }
   0x9   :  { %599 = shalt.err (!%p596_p2)
}
   0xa   :  { %s600_s10 = scalar_lea.vmem %s32_s25, 1024  ;;  %p605_p4 = scmp.lt.s32.totalorder %s32_s25, %s32_s25 }
   0xb   :  { %p601_p3 = scmp.ne.s32.totalorder %s32_s25, %s600_s10  ;;  %p606_p5 = scmp.lt.s32.totalorder %s600_s10, %s600_s10 }
   0xd   :  { %p607_p6 = por %p606_p5, %p605_p4 }
   0xf   :  { %p608_p7 = pnand %p607_p6, %p601_p3 }
  0x11   :  { %611 = shalt.err (!%p608_p7)
}
  0x12   :  { %s709_s11 = smov 64   ;;  %s710_s12 = smov 4  }
  0x13   :  { %37 = dma.hbm_to_vmem [thread:$0]  %s866_s1, 1024, %s32_s25, [#allocation6], %s709_s11, %s709_s11, %s710_s12  }
  0x14   :  { %s711_s15 = smov [#allocation2]   ;;  %s712_s17 = smov [#allocation7]  }
  0x15   :  { %s22_s16 = sshll.u32 %s711_s15, 4  ;;  %s45_s18 = sshll.u32 %s712_s17, 4  ;;  %s23_s16 = int_to_ptr.vmem [resolvable:$true] %s22_s16  ;;  %s46_s18 = int_to_ptr.vmem [resolvable:$true] %s45_s18 }
  0x16   :  { %s612_s21 = scalar_lea.hbm %s865_s0, 128 }
  0x17   :  { %p613_p8 = scmp.ne.s32.totalorder %s865_s0, %s612_s21  ;;  %p616_p9 = scmp.lt.u32.totalorder %s612_s21, %s865_s0 }
  0x19   :  { %p618_p10 = pnand %p616_p9, %p613_p8 }
  0x1b   :  { %621 = shalt.err (!%p618_p10)
}
  0x1c   :  { %s622_s1 = scalar_lea.vmem %s23_s16, 128  ;;  %p627_p12 = scmp.lt.s32.totalorder %s23_s16, %s23_s16 }
  0x1d   :  { %p623_p11 = scmp.ne.s32.totalorder %s23_s16, %s622_s1  ;;  %p628_p13 = scmp.lt.s32.totalorder %s622_s1, %s622_s1 }
  0x1f   :  { %p629_p0 = por %p628_p13, %p627_p12 }
  0x21   :  { %p630_p1 = pnand %p629_p0, %p623_p11 }
  0x23   :  { %633 = shalt.err (!%p630_p1)
}
  0x24   :  { %25 = dma.hbm_to_vmem [thread:$0]  %s865_s0, 128, %s23_s16, [#allocation3]  }
  0x25   :  { %s634_s30 = scalar_lea.hbm %s868_s3, 1024 }
  0x26   :  { %p635_p2 = scmp.ne.s32.totalorder %s868_s3, %s634_s30  ;;  %p638_p3 = scmp.lt.u32.totalorder %s634_s30, %s868_s3 }
  0x28   :  { %p640_p4 = pnand %p638_p3, %p635_p2 }
  0x2a   :  { %643 = shalt.err (!%p640_p4)
}
  0x2b   :  { %s644_s14 = scalar_lea.vmem %s46_s18, 1024  ;;  %p649_p6 = scmp.lt.s32.totalorder %s46_s18, %s46_s18 }
  0x2c   :  { %p645_p5 = scmp.ne.s32.totalorder %s46_s18, %s644_s14  ;;  %p650_p7 = scmp.lt.s32.totalorder %s644_s14, %s644_s14 }
  0x2e   :  { %p651_p8 = por %p650_p7, %p649_p6 }
  0x30   :  { %p652_p9 = pnand %p651_p8, %p645_p5 }
  0x32   :  { %655 = shalt.err (!%p652_p9)
}
  0x33   :  { %51 = dma.hbm_to_vmem [thread:$0]  %s868_s3, 1024, %s46_s18, [#allocation6], %s709_s11, %s709_s11, %s710_s12  }
  0x34   :  { %s713_s16 = smov [#allocation8]   ;;  %s656_s21 = scalar_lea.hbm %s870_s5, 1024 }
  0x35   :  { %s59_s17 = sshll.u32 %s713_s16, 4  ;;  %p657_p10 = scmp.ne.s32.totalorder %s870_s5, %s656_s21  ;;  %s60_s17 = int_to_ptr.vmem [resolvable:$true] %s59_s17 }
  0x36   :  { %p660_p11 = scmp.lt.u32.totalorder %s656_s21, %s870_s5 }
  0x38   :  { %p662_p12 = pnand %p660_p11, %p657_p10 }
  0x3a   :  { %665 = shalt.err (!%p662_p12)
}
  0x3b   :  { %s666_s1 = scalar_lea.vmem %s60_s17, 1024  ;;  %p671_p0 = scmp.lt.s32.totalorder %s60_s17, %s60_s17 }
  0x3c   :  { %p667_p13 = scmp.ne.s32.totalorder %s60_s17, %s666_s1  ;;  %p672_p1 = scmp.lt.s32.totalorder %s666_s1, %s666_s1 }
  0x3e   :  { %p673_p2 = por %p672_p1, %p671_p0 }
  0x40   :  { %p674_p3 = pnand %p673_p2, %p667_p13 }
  0x42   :  { %677 = shalt.err (!%p674_p3)
}
  0x43   :  { %65 = dma.hbm_to_vmem [thread:$0]  %s870_s5, 1024, %s60_s17, [#allocation9], %s709_s11, %s709_s11, %s710_s12  }
  0x44   :  { %700 = dma.done.wait [#allocation3], 128  }
  0x45   :  { %701 = vsyncadd [#allocation3], 4294967168 }
  0x46   :  { %702 = dma.done.wait [#allocation6], 2048  }
  0x47   :  { %703 = vsyncadd [#allocation6], 4294965248 }
  0x48   :  { %704 = dma.done.wait [#allocation9], 1024  }
  0x49   :  { %705 = vsyncadd [#allocation9], 4294966272  ;;  %v714_v0 = vmov 0.0   ;;  %vm715_vm0 = vmmov 0   ;;  %v562_v1 = vld [vmem:[#allocation5] sm:$0xff]   ;;  %v563_v2 = vld [vmem:[#allocation5 + $0x8] sm:$0xff]  }
  0x4a   :  { %493 = vmatprep.subr.bf16.mxu0 %v714_v0  ;;  %509 = vmatprep.mubr.msk.bf16.mxu0 %vm715_vm0, %v714_v0  ;;  %v564_v3 = vld [vmem:[#allocation5 + $0x10] sm:$0xff]   ;;  %v570_v4 = vld [vmem:[#allocation7] sm:$0xff]   ;;  %v565_v5 = vld [vmem:[#allocation5 + $0x18] sm:$0xff]   ;;  %s716_s28 = smov [#allocation10]  }
  0x4b   :  { %513 = vmatprep.subr.bf16.mxu1 %v714_v0  ;;  %529 = vmatprep.mubr.msk.bf16.mxu1 %vm715_vm0, %v714_v0  ;;  %v571_v6 = vld [vmem:[#allocation7 + $0x8] sm:$0xff]   ;;  %v566_v7 = vld [vmem:[#allocation5 + $0x20] sm:$0xff]   ;;  %v572_v8 = vld [vmem:[#allocation7 + $0x10] sm:$0xff]   ;;  %s428_s29 = sshll.u32 %s716_s28, 4  ;;  %s429_s29 = int_to_ptr.vmem [resolvable:$true] %s428_s29 }
  0x4c   :  { %494 = vmatpush3.bf16.msra.mxu0 %v562_v1  ;;  %514 = vmatpush3.bf16.msra.mxu1 %v570_v4  ;;  %v567_v9 = vld [vmem:[#allocation5 + $0x28] sm:$0xff]   ;;  %v573_v10 = vld [vmem:[#allocation7 + $0x18] sm:$0xff]   ;;  %v568_v11 = vld [vmem:[#allocation5 + $0x30] sm:$0xff]   ;;  %p683_p5 = scmp.lt.s32.totalorder %s429_s29, %s429_s29 }
  0x4d   :  { %495 = vmatprep.subr.bf16.mxu0 %v714_v0  ;;  %515 = vmatprep.subr.bf16.mxu1 %v714_v0  ;;  %v569_v12 = vld [vmem:[#allocation5 + $0x38] sm:$0xff]   ;;  %v574_v15 = vld [vmem:[#allocation7 + $0x20] sm:$0xff]   ;;  %v575_v16 = vld [vmem:[#allocation7 + $0x28] sm:$0xff]  }
  0x4e   :  { %v81_v13 = vld [vmem:[#allocation2] sm:$0xff]  ;;  %v576_v17 = vld [vmem:[#allocation7 + $0x30] sm:$0xff]   ;;  %v578_v19 = vld [vmem:[#allocation8] sm:$0xff]  }
  0x4f   :  { %v82_v14 = vpack.c.bf16 %v81_v13, %v81_v13  ;;  %v577_v18 = vld [vmem:[#allocation7 + $0x38] sm:$0xff]   ;;  %v579_v20 = vld [vmem:[#allocation8 + $0x8] sm:$0xff]   ;;  %v580_v21 = vld [vmem:[#allocation8 + $0x10] sm:$0xff]  }
  0x50   :  { %496 = vmatpush3.bf16.msra.mxu0 %v563_v2  ;;  %516 = vmatpush3.bf16.msra.mxu1 %v571_v6  ;;  %v581_v22 = vld [vmem:[#allocation8 + $0x18] sm:$0xff]   ;;  %v582_v31 = vld [vmem:[#allocation8 + $0x20] sm:$0xff]   ;;  %v583_v32 = vld [vmem:[#allocation8 + $0x28] sm:$0xff]  }
  0x51   :  { %497 = vmatprep.subr.bf16.mxu0 %v714_v0  ;;  %517 = vmatprep.subr.bf16.mxu1 %v714_v0  ;;  %v439_v23 = vld [vmem:[%s867_s2] ss:$0 sm:$0xff]  ;;  %v584_v33 = vld [vmem:[#allocation8 + $0x30] sm:$0xff]  }
  0x52   :  { %v585_v34 = vld [vmem:[#allocation8 + $0x38] sm:$0xff]  }
  0x53   :  { %v448_v35 = vld [vmem:[%s869_s4] ss:$0 sm:$0xff]  ;;  %s678_s4 = scalar_lea.vmem %s429_s29, 64 }
  0x54   :  { %498 = vmatpush3.bf16.msra.mxu0 %v564_v3  ;;  %518 = vmatpush3.bf16.msra.mxu1 %v572_v8  ;;  %v457_v43 = vld [vmem:[%s871_s6] ss:$0 sm:$0xff]  ;;  %p679_p4 = scmp.ne.s32.totalorder %s429_s29, %s678_s4  ;;  %p684_p6 = scmp.lt.s32.totalorder %s678_s4, %s678_s4 }
  0x55   :  { %499 = vmatprep.subr.bf16.mxu0 %v714_v0  ;;  %519 = vmatprep.subr.bf16.mxu1 %v714_v0 }
  0x56   :  { %p685_p7 = por %p684_p6, %p683_p5 }
  0x58   :  { %500 = vmatpush3.bf16.msra.mxu0 %v565_v5  ;;  %520 = vmatpush3.bf16.msra.mxu1 %v573_v10  ;;  %p686_p8 = pnand %p685_p7, %p679_p4 }
  0x59   :  { %501 = vmatprep.subr.bf16.mxu0 %v714_v0  ;;  %521 = vmatprep.subr.bf16.mxu1 %v714_v0 }
  0x5c   :  { %502 = vmatpush3.bf16.msra.mxu0 %v566_v7  ;;  %522 = vmatpush3.bf16.msra.mxu1 %v574_v15 }
  0x5d   :  { %503 = vmatprep.subr.bf16.mxu0 %v714_v0  ;;  %523 = vmatprep.subr.bf16.mxu1 %v714_v0 }
  0x60   :  { %504 = vmatpush3.bf16.msra.mxu0 %v567_v9  ;;  %524 = vmatpush3.bf16.msra.mxu1 %v575_v16 }
  0x61   :  { %505 = vmatprep.subr.bf16.mxu0 %v714_v0  ;;  %525 = vmatprep.subr.bf16.mxu1 %v714_v0 }
  0x64   :  { %506 = vmatpush3.bf16.msra.mxu0 %v568_v11  ;;  %526 = vmatpush3.bf16.msra.mxu1 %v576_v17 }
  0x65   :  { %507 = vmatprep.subr.bf16.mxu0 %v714_v0  ;;  %527 = vmatprep.subr.bf16.mxu1 %v714_v0 }
  0x68   :  { %508 = vmatpush3.bf16.msra.mxu0 %v569_v12  ;;  %528 = vmatpush3.bf16.msra.mxu1 %v577_v18 }
  0x69   :  { %533 = vmatprep.subr.bf16.mxu0 %v714_v0 }
  0x6b   :  { %510 = vmatmul.mubr.bf16.vlgmr.msra.gmra.mrb[0].mxu0 %v82_v14 }
  0x6c   :  { %549 = vmatprep.mubr.msk.bf16.mxu0 %vm715_vm0, %v714_v0  ;;  %534 = vmatpush3.bf16.msra.mxu0 %v578_v19 }
  0x6d   :  { %535 = vmatprep.subr.bf16.mxu0 %v714_v0 }
  0x70   :  { %536 = vmatpush3.bf16.msra.mxu0 %v579_v20 }
  0x71   :  { %537 = vmatprep.subr.bf16.mxu0 %v714_v0 }
  0x74   :  { %538 = vmatpush3.bf16.msra.mxu0 %v580_v21 }
  0x75   :  { %539 = vmatprep.subr.bf16.mxu0 %v714_v0 }
  0x78   :  { %540 = vmatpush3.bf16.msra.mxu0 %v581_v22 }
  0x79   :  { %541 = vmatprep.subr.bf16.mxu0 %v714_v0 }
  0x7c   :  { %542 = vmatpush3.bf16.msra.mxu0 %v582_v31 }
  0x7d   :  { %543 = vmatprep.subr.bf16.mxu0 %v714_v0 }
  0x80   :  { %544 = vmatpush3.bf16.msra.mxu0 %v583_v32 }
  0x81   :  { %545 = vmatprep.subr.bf16.mxu0 %v714_v0 }
  0x84   :  { %546 = vmatpush3.bf16.msra.mxu0 %v584_v33 }
  0x85   :  { %547 = vmatprep.subr.bf16.mxu0 %v714_v0 }
  0x88   :  { %548 = vmatpush3.bf16.msra.mxu0 %v585_v34 }
 0x13e   :  { %v188_v24 = vpop.f32.mrb[0].mxu0 }
 0x13f   :  { %v189_v25 = vadd.f32 %v439_v23, %v188_v24  ;;  %v511_v26 = vpop.f32.mrb[1].mxu0 }
 0x140   :  { %v191_v27 = vpop.f32.mrb[2].mxu0 }
 0x141   :  { %586 = vtanh.f32 %v189_v25  ;;  %v512_v28 = vpop.f32.mrb[3].mxu0 }
 0x14b   :  { %v587_v29 = vpop.eup %586 }
 0x14c   :  { %v195_v30 = vpack.c.bf16 %v587_v29, %v587_v29 }
 0x14e   :  { %530 = vmatmul.mubr.bf16.vlgmr.msra.gmra.mrb[0].mxu1 %v195_v30 }
 0x221   :  { %v301_v36 = vpop.f32.mrb[0].mxu1 }
 0x222   :  { %v302_v37 = vadd.f32 %v448_v35, %v301_v36  ;;  %v531_v38 = vpop.f32.mrb[1].mxu1 }
 0x223   :  { %v304_v39 = vpop.f32.mrb[2].mxu1 }
 0x224   :  { %588 = vtanh.f32 %v302_v37  ;;  %v532_v40 = vpop.f32.mrb[3].mxu1 }
 0x22e   :  { %v589_v41 = vpop.eup %588 }
 0x22f   :  { %v308_v42 = vpack.c.bf16 %v589_v41, %v589_v41 }
 0x231   :  { %550 = vmatmul.mubr.bf16.vlgmr.msra.gmra.mrb[4].mxu0 %v308_v42 }
 0x304   :  { %v414_v44 = vpop.f32.mrb[4].mxu0 }
 0x305   :  { %v415_v45 = vadd.f32 %v457_v43, %v414_v44  ;;  %v551_v46 = vpop.f32.mrb[5].mxu0 }
 0x306   :  { %v417_v47 = vpop.f32.mrb[6].mxu0 }
 0x307   :  { %v420_v48 = vpack.c.bf16 %v415_v45, %v415_v45  ;;  %v552_v49 = vpop.f32.mrb[7].mxu0 }
 0x309   :  { %421 = vst [vmem:[#allocation10] sm:$0xf] %v420_v48 }
 0x30a   :  { %689 = shalt.err (!%p686_p8)
}
 0x30b   :  { %s690_s6 = scalar_lea.hbm %s872_s7, 64 }
 0x30c   :  { %p691_p9 = scmp.ne.s32.totalorder %s872_s7, %s690_s6  ;;  %p694_p10 = scmp.lt.u32.totalorder %s690_s6, %s872_s7 }
 0x30e   :  { %p696_p11 = pnand %p694_p10, %p691_p9 }
 0x310   :  { %699 = shalt.err (!%p696_p11)
}
 0x311   :  { %431 = dma.vmem_to_hbm [thread:$0]  %s429_s29, 64, %s872_s7, [#allocation4]  }
 0x312   :  { %706 = dma.done.wait [#allocation4], 64  }
 0x313   :  { %707 = vsyncadd [#allocation4], 4294967232 }
 0x314   :  { %435 = vsyncpa [#allocation3], 1 }
 0x315   :  { %436 = vsyncpa [#allocation6], 1 }
 0x316   :  { %437 = vsyncpa [#allocation9], 1 }
 0x317   :  { %438 = vsyncpa [#allocation4], 1 }

// kernel: tpu_custom_call.1
= control target key start
LH: loop header
LB: loop body
LE: loop exit
PB: predicated region body
PF: predicated region fallthrough
CT: control target
= control target key end

     0   :  { %12 = vsyncpa [#allocation3], 0  ;;  %s865_s0 = inlined_call_operand.hbm [shape: f32[8,128], index: 0, kind: input, shape index: {}]   ;;  %s866_s1 = inlined_call_operand.hbm [shape: bf16[128,128], index: 1, kind: input, shape index: {}]   ;;  %s867_s2 = inlined_call_operand.vmem [shape: f32[1,128], index: 2, kind: input, shape index: {}]   ;;  %s868_s3 = inlined_call_operand.hbm [shape: bf16[128,128], index: 3, kind: input, shape index: {}]   ;;  %s869_s4 = inlined_call_operand.vmem [shape: f32[1,128], index: 4, kind: input, shape index: {}]   ;;  %s870_s5 = inlined_call_operand.hbm [shape: bf16[128,128], index: 5, kind: input, shape index: {}]   ;;  %s871_s6 = inlined_call_operand.vmem [shape: f32[1,128], index: 6, kind: input, shape index: {}]   ;;  %s872_s7 = inlined_call_operand.hbm [shape: bf16[8,128], index: 7, kind: output, shape index: {}]  }
   0x1   :  { %13 = vsyncpa [#allocation6], 0 }
   0x2   :  { %14 = vsyncpa [#allocation9], 0 }
   0x3   :  { %15 = vsyncpa [#allocation4], 0  ;;  %s708_s24 = smov [#allocation5]   ;;  %s590_s28 = scalar_lea.hbm %s866_s1, 1024 }
   0x4   :  { %s31_s25 = sshll.u32 %s708_s24, 4  ;;  %p591_p0 = scmp.ne.s32.totalorder %s866_s1, %s590_s28  ;;  %s32_s25 = int_to_ptr.vmem [resolvable:$true] %s31_s25 }
   0x5   :  { %p594_p1 = scmp.lt.u32.totalorder %s590_s28, %s866_s1 }
   0x7   :  { %p596_p2 = pnand %p594_p1, %p591_p0 }
   0x9   :  { %599 = shalt.err (!%p596_p2)
}
   0xa   :  { %s600_s10 = scalar_lea.vmem %s32_s25, 1024  ;;  %p605_p4 = scmp.lt.s32.totalorder %s32_s25, %s32_s25 }
   0xb   :  { %p601_p3 = scmp.ne.s32.totalorder %s32_s25, %s600_s10  ;;  %p606_p5 = scmp.lt.s32.totalorder %s600_s10, %s600_s10 }
   0xd   :  { %p607_p6 = por %p606_p5, %p605_p4 }
   0xf   :  { %p608_p7 = pnand %p607_p6, %p601_p3 }
  0x11   :  { %611 = shalt.err (!%p608_p7)
}
  0x12   :  { %s709_s11 = smov 64   ;;  %s710_s12 = smov 4  }
  0x13   :  { %37 = dma.hbm_to_vmem [thread:$0]  %s866_s1, 1024, %s32_s25, [#allocation6], %s709_s11, %s709_s11, %s710_s12  }
  0x14   :  { %s711_s15 = smov [#allocation2]   ;;  %s712_s17 = smov [#allocation7]  }
  0x15   :  { %s22_s16 = sshll.u32 %s711_s15, 4  ;;  %s45_s18 = sshll.u32 %s712_s17, 4  ;;  %s23_s16 = int_to_ptr.vmem [resolvable:$true] %s22_s16  ;;  %s46_s18 = int_to_ptr.vmem [resolvable:$true] %s45_s18 }
  0x16   :  { %s612_s21 = scalar_lea.hbm %s865_s0, 128 }
  0x17   :  { %p613_p8 = scmp.ne.s32.totalorder %s865_s0, %s612_s21  ;;  %p616_p9 = scmp.lt.u32.totalorder %s612_s21, %s865_s0 }
  0x19   :  { %p618_p10 = pnand %p616_p9, %p613_p8 }
  0x1b   :  { %621 = shalt.err (!%p618_p10)
}
  0x1c   :  { %s622_s1 = scalar_lea.vmem %s23_s16, 128  ;;  %p627_p12 = scmp.lt.s32.totalorder %s23_s16, %s23_s16 }
  0x1d   :  { %p623_p11 = scmp.ne.s32.totalorder %s23_s16, %s622_s1  ;;  %p628_p13 = scmp.lt.s32.totalorder %s622_s1, %s622_s1 }
  0x1f   :  { %p629_p0 = por %p628_p13, %p627_p12 }
  0x21   :  { %p630_p1 = pnand %p629_p0, %p623_p11 }
  0x23   :  { %633 = shalt.err (!%p630_p1)
}
  0x24   :  { %25 = dma.hbm_to_vmem [thread:$0]  %s865_s0, 128, %s23_s16, [#allocation3]  }
  0x25   :  { %s634_s30 = scalar_lea.hbm %s868_s3, 1024 }
  0x26   :  { %p635_p2 = scmp.ne.s32.totalorder %s868_s3, %s634_s30  ;;  %p638_p3 = scmp.lt.u32.totalorder %s634_s30, %s868_s3 }
  0x28   :  { %p640_p4 = pnand %p638_p3, %p635_p2 }
  0x2a   :  { %643 = shalt.err (!%p640_p4)
}
  0x2b   :  { %s644_s14 = scalar_lea.vmem %s46_s18, 1024  ;;  %p649_p6 = scmp.lt.s32.totalorder %s46_s18, %s46_s18 }
  0x2c   :  { %p645_p5 = scmp.ne.s32.totalorder %s46_s18, %s644_s14  ;;  %p650_p7 = scmp.lt.s32.totalorder %s644_s14, %s644_s14 }
  0x2e   :  { %p651_p8 = por %p650_p7, %p649_p6 }
  0x30   :  { %p652_p9 = pnand %p651_p8, %p645_p5 }
  0x32   :  { %655 = shalt.err (!%p652_p9)
}
  0x33   :  { %51 = dma.hbm_to_vmem [thread:$0]  %s868_s3, 1024, %s46_s18, [#allocation6], %s709_s11, %s709_s11, %s710_s12  }
  0x34   :  { %s713_s16 = smov [#allocation8]   ;;  %s656_s21 = scalar_lea.hbm %s870_s5, 1024 }
  0x35   :  { %s59_s17 = sshll.u32 %s713_s16, 4  ;;  %p657_p10 = scmp.ne.s32.totalorder %s870_s5, %s656_s21  ;;  %s60_s17 = int_to_ptr.vmem [resolvable:$true] %s59_s17 }
  0x36   :  { %p660_p11 = scmp.lt.u32.totalorder %s656_s21, %s870_s5 }
  0x38   :  { %p662_p12 = pnand %p660_p11, %p657_p10 }
  0x3a   :  { %665 = shalt.err (!%p662_p12)
}
  0x3b   :  { %s666_s1 = scalar_lea.vmem %s60_s17, 1024  ;;  %p671_p0 = scmp.lt.s32.totalorder %s60_s17, %s60_s17 }
  0x3c   :  { %p667_p13 = scmp.ne.s32.totalorder %s60_s17, %s666_s1  ;;  %p672_p1 = scmp.lt.s32.totalorder %s666_s1, %s666_s1 }
  0x3e   :  { %p673_p2 = por %p672_p1, %p671_p0 }
  0x40   :  { %p674_p3 = pnand %p673_p2, %p667_p13 }
  0x42   :  { %677 = shalt.err (!%p674_p3)
}
  0x43   :  { %65 = dma.hbm_to_vmem [thread:$0]  %s870_s5, 1024, %s60_s17, [#allocation9], %s709_s11, %s709_s11, %s710_s12  }
  0x44   :  { %700 = dma.done.wait [#allocation3], 128  }
  0x45   :  { %701 = vsyncadd [#allocation3], 4294967168 }
  0x46   :  { %702 = dma.done.wait [#allocation6], 2048  }
  0x47   :  { %703 = vsyncadd [#allocation6], 4294965248 }
  0x48   :  { %704 = dma.done.wait [#allocation9], 1024  }
  0x49   :  { %705 = vsyncadd [#allocation9], 4294966272  ;;  %v714_v0 = vmov 0.0   ;;  %vm715_vm0 = vmmov 0   ;;  %v562_v1 = vld [vmem:[#allocation5] sm:$0xff]   ;;  %v563_v2 = vld [vmem:[#allocation5 + $0x8] sm:$0xff]  }
  0x4a   :  { %493 = vmatprep.subr.bf16.mxu0 %v714_v0  ;;  %509 = vmatprep.mubr.msk.bf16.mxu0 %vm715_vm0, %v714_v0  ;;  %v564_v3 = vld [vmem:[#allocation5 + $0x10] sm:$0xff]   ;;  %v570_v4 = vld [vmem:[#allocation7] sm:$0xff]   ;;  %v565_v5 = vld [vmem:[#allocation5 + $0x18] sm:$0xff]   ;;  %s716_s28 = smov [#allocation10]  }
  0x4b   :  { %513 = vmatprep.subr.bf16.mxu1 %v714_v0  ;;  %529 = vmatprep.mubr.msk.bf16.mxu1 %vm715_vm0, %v714_v0  ;;  %v571_v6 = vld [vmem:[#allocation7 + $0x8] sm:$0xff]   ;;  %v566_v7 = vld [vmem:[#allocation5 + $0x20] sm:$0xff]   ;;  %v572_v8 = vld [vmem:[#allocation7 + $0x10] sm:$0xff]   ;;  %s428_s29 = sshll.u32 %s716_s28, 4  ;;  %s429_s29 = int_to_ptr.vmem [resolvable:$true] %s428_s29 }
  0x4c   :  { %494 = vmatpush3.bf16.msra.mxu0 %v562_v1  ;;  %514 = vmatpush3.bf16.msra.mxu1 %v570_v4  ;;  %v567_v9 = vld [vmem:[#allocation5 + $0x28] sm:$0xff]   ;;  %v573_v10 = vld [vmem:[#allocation7 + $0x18] sm:$0xff]   ;;  %v568_v11 = vld [vmem:[#allocation5 + $0x30] sm:$0xff]   ;;  %p683_p5 = scmp.lt.s32.totalorder %s429_s29, %s429_s29 }
  0x4d   :  { %495 = vmatprep.subr.bf16.mxu0 %v714_v0  ;;  %515 = vmatprep.subr.bf16.mxu1 %v714_v0  ;;  %v569_v12 = vld [vmem:[#allocation5 + $0x38] sm:$0xff]   ;;  %v574_v15 = vld [vmem:[#allocation7 + $0x20] sm:$0xff]   ;;  %v575_v16 = vld [vmem:[#allocation7 + $0x28] sm:$0xff]  }
  0x4e   :  { %v81_v13 = vld [vmem:[#allocation2] sm:$0xff]  ;;  %v576_v17 = vld [vmem:[#allocation7 + $0x30] sm:$0xff]   ;;  %v578_v19 = vld [vmem:[#allocation8] sm:$0xff]  }
  0x4f   :  { %v82_v14 = vpack.c.bf16 %v81_v13, %v81_v13  ;;  %v577_v18 = vld [vmem:[#allocation7 + $0x38] sm:$0xff]   ;;  %v579_v20 = vld [vmem:[#allocation8 + $0x8] sm:$0xff]   ;;  %v580_v21 = vld [vmem:[#allocation8 + $0x10] sm:$0xff]  }
  0x50   :  { %496 = vmatpush3.bf16.msra.mxu0 %v563_v2  ;;  %516 = vmatpush3.bf16.msra.mxu1 %v571_v6  ;;  %v581_v22 = vld [vmem:[#allocation8 + $0x18] sm:$0xff]   ;;  %v582_v31 = vld [vmem:[#allocation8 + $0x20] sm:$0xff]   ;;  %v583_v32 = vld [vmem:[#allocation8 + $0x28] sm:$0xff]  }
  0x51   :  { %497 = vmatprep.subr.bf16.mxu0 %v714_v0  ;;  %517 = vmatprep.subr.bf16.mxu1 %v714_v0  ;;  %v439_v23 = vld [vmem:[%s867_s2] ss:$0 sm:$0xff]  ;;  %v584_v33 = vld [vmem:[#allocation8 + $0x30] sm:$0xff]  }
  0x52   :  { %v585_v34 = vld [vmem:[#allocation8 + $0x38] sm:$0xff]  }
  0x53   :  { %v448_v35 = vld [vmem:[%s869_s4] ss:$0 sm:$0xff]  ;;  %s678_s4 = scalar_lea.vmem %s429_s29, 64 }
  0x54   :  { %498 = vmatpush3.bf16.msra.mxu0 %v564_v3  ;;  %518 = vmatpush3.bf16.msra.mxu1 %v572_v8  ;;  %v457_v43 = vld [vmem:[%s871_s6] ss:$0 sm:$0xff]  ;;  %p679_p4 = scmp.ne.s32.totalorder %s429_s29, %s678_s4  ;;  %p684_p6 = scmp.lt.s32.totalorder %s678_s4, %s678_s4 }
  0x55   :  { %499 = vmatprep.subr.bf16.mxu0 %v714_v0  ;;  %519 = vmatprep.subr.bf16.mxu1 %v714_v0 }
  0x56   :  { %p685_p7 = por %p684_p6, %p683_p5 }
  0x58   :  { %500 = vmatpush3.bf16.msra.mxu0 %v565_v5  ;;  %520 = vmatpush3.bf16.msra.mxu1 %v573_v10  ;;  %p686_p8 = pnand %p685_p7, %p679_p4 }
  0x59   :  { %501 = vmatprep.subr.bf16.mxu0 %v714_v0  ;;  %521 = vmatprep.subr.bf16.mxu1 %v714_v0 }
  0x5c   :  { %502 = vmatpush3.bf16.msra.mxu0 %v566_v7  ;;  %522 = vmatpush3.bf16.msra.mxu1 %v574_v15 }
  0x5d   :  { %503 = vmatprep.subr.bf16.mxu0 %v714_v0  ;;  %523 = vmatprep.subr.bf16.mxu1 %v714_v0 }
  0x60   :  { %504 = vmatpush3.bf16.msra.mxu0 %v567_v9  ;;  %524 = vmatpush3.bf16.msra.mxu1 %v575_v16 }
  0x61   :  { %505 = vmatprep.subr.bf16.mxu0 %v714_v0  ;;  %525 = vmatprep.subr.bf16.mxu1 %v714_v0 }
  0x64   :  { %506 = vmatpush3.bf16.msra.mxu0 %v568_v11  ;;  %526 = vmatpush3.bf16.msra.mxu1 %v576_v17 }
  0x65   :  { %507 = vmatprep.subr.bf16.mxu0 %v714_v0  ;;  %527 = vmatprep.subr.bf16.mxu1 %v714_v0 }
  0x68   :  { %508 = vmatpush3.bf16.msra.mxu0 %v569_v12  ;;  %528 = vmatpush3.bf16.msra.mxu1 %v577_v18 }
  0x69   :  { %533 = vmatprep.subr.bf16.mxu0 %v714_v0 }
  0x6b   :  { %510 = vmatmul.mubr.bf16.vlgmr.msra.gmra.mrb[0].mxu0 %v82_v14 }
  0x6c   :  { %549 = vmatprep.mubr.msk.bf16.mxu0 %vm715_vm0, %v714_v0  ;;  %534 = vmatpush3.bf16.msra.mxu0 %v578_v19 }
  0x6d   :  { %535 = vmatprep.subr.bf16.mxu0 %v714_v0 }
  0x70   :  { %536 = vmatpush3.bf16.msra.mxu0 %v579_v20 }
  0x71   :  { %537 = vmatprep.subr.bf16.mxu0 %v714_v0 }
  0x74   :  { %538 = vmatpush3.bf16.msra.mxu0 %v580_v21 }
  0x75   :  { %539 = vmatprep.subr.bf16.mxu0 %v714_v0 }
  0x78   :  { %540 = vmatpush3.bf16.msra.mxu0 %v581_v22 }
  0x79   :  { %541 = vmatprep.subr.bf16.mxu0 %v714_v0 }
  0x7c   :  { %542 = vmatpush3.bf16.msra.mxu0 %v582_v31 }
  0x7d   :  { %543 = vmatprep.subr.bf16.mxu0 %v714_v0 }
  0x80   :  { %544 = vmatpush3.bf16.msra.mxu0 %v583_v32 }
  0x81   :  { %545 = vmatprep.subr.bf16.mxu0 %v714_v0 }
  0x84   :  { %546 = vmatpush3.bf16.msra.mxu0 %v584_v33 }
  0x85   :  { %547 = vmatprep.subr.bf16.mxu0 %v714_v0 }
  0x88   :  { %548 = vmatpush3.bf16.msra.mxu0 %v585_v34 }
 0x13e   :  { %v188_v24 = vpop.f32.mrb[0].mxu0 }
 0x13f   :  { %v189_v25 = vadd.f32 %v439_v23, %v188_v24  ;;  %v511_v26 = vpop.f32.mrb[1].mxu0 }
 0x140   :  { %v191_v27 = vpop.f32.mrb[2].mxu0 }
 0x141   :  { %586 = vtanh.f32 %v189_v25  ;;  %v512_v28 = vpop.f32.mrb[3].mxu0 }
 0x14b   :  { %v587_v29 = vpop.eup %586 }
 0x14c   :  { %v195_v30 = vpack.c.bf16 %v587_v29, %v587_v29 }
 0x14e   :  { %530 = vmatmul.mubr.bf16.vlgmr.msra.gmra.mrb[0].mxu1 %v195_v30 }
 0x221   :  { %v301_v36 = vpop.f32.mrb[0].mxu1 }
 0x222   :  { %v302_v37 = vadd.f32 %v448_v35, %v301_v36  ;;  %v531_v38 = vpop.f32.mrb[1].mxu1 }
 0x223   :  { %v304_v39 = vpop.f32.mrb[2].mxu1 }
 0x224   :  { %588 = vtanh.f32 %v302_v37  ;;  %v532_v40 = vpop.f32.mrb[3].mxu1 }
 0x22e   :  { %v589_v41 = vpop.eup %588 }
 0x22f   :  { %v308_v42 = vpack.c.bf16 %v589_v41, %v589_v41 }
 0x231   :  { %550 = vmatmul.mubr.bf16.vlgmr.msra.gmra.mrb[4].mxu0 %v308_v42 }
 0x304   :  { %v414_v44 = vpop.f32.mrb[4].mxu0 }
 0x305   :  { %v415_v45 = vadd.f32 %v457_v43, %v414_v44  ;;  %v551_v46 = vpop.f32.mrb[5].mxu0 }
 0x306   :  { %v417_v47 = vpop.f32.mrb[6].mxu0 }
 0x307   :  { %v420_v48 = vpack.c.bf16 %v415_v45, %v415_v45  ;;  %v552_v49 = vpop.f32.mrb[7].mxu0 }
 0x309   :  { %421 = vst [vmem:[#allocation10] sm:$0xf] %v420_v48 }
 0x30a   :  { %689 = shalt.err (!%p686_p8)
}
 0x30b   :  { %s690_s6 = scalar_lea.hbm %s872_s7, 64 }
 0x30c   :  { %p691_p9 = scmp.ne.s32.totalorder %s872_s7, %s690_s6  ;;  %p694_p10 = scmp.lt.u32.totalorder %s690_s6, %s872_s7 }
 0x30e   :  { %p696_p11 = pnand %p694_p10, %p691_p9 }
 0x310   :  { %699 = shalt.err (!%p696_p11)
}
 0x311   :  { %431 = dma.vmem_to_hbm [thread:$0]  %s429_s29, 64, %s872_s7, [#allocation4]  }
 0x312   :  { %706 = dma.done.wait [#allocation4], 64  }
 0x313   :  { %707 = vsyncadd [#allocation4], 4294967232 }
 0x314   :  { %435 = vsyncpa [#allocation3], 1 }
 0x315   :  { %436 = vsyncpa [#allocation6], 1 }
 0x316   :  { %437 = vsyncpa [#allocation9], 1 }
 0x317   :  { %438 = vsyncpa [#allocation4], 1 }

</bundles_post_ra>
